<compile_context>
chip_gen: v6e
topology: v6e:2x2x1
jax: 0.10.0
libtpu: 0.0.40
codegen_flags: <defaults>
</compile_context>

<pallas_src>
import functools

import jax
import jax.numpy as jnp
from jax.experimental import pallas as pl
from jax.experimental.pallas import tpu as pltpu

LANES = 128
SUBLANES = 8
MAX_BLOCK_ROWS = 8192   # 8192 * 128 * 4 B = 4 MiB per f32 input tile
NUM_CORES = 2           # leading "parallel" axis; ~2x on v7x, harmless elsewhere
_NEG_PAD = -1e9         # sigmoid(_NEG_PAD) == 0 exactly -> pad contributes nothing


def _iou_kernel(x_ref, t_ref, acc_i_ref, acc_u_ref, *, block_rows):
    """One grid step: stream a (block_rows, 128) tile, accumulate vreg partials.

    x_ref, t_ref : (block_rows, 128) input tiles (native dtype)
    acc_i_ref    : (1, 8, 128) f32 output block = running sum of sigmoid(x)*t
    acc_u_ref    : (1, 8, 128) f32 output block = running sum of sigmoid(x)+t
    Output blocks keep the same index across the inner ("arbitrary") axis, so
    they stay resident in VMEM and act as the accumulators.
    """
    i = pl.program_id(1)

    @pl.when(i == 0)
    def _init():
        acc_i_ref[...] = jnp.zeros_like(acc_i_ref)
        acc_u_ref[...] = jnp.zeros_like(acc_u_ref)

    x = x_ref[...].astype(jnp.float32)
    t = t_ref[...].astype(jnp.float32)

    # 1-EUP sigmoid: sigmoid(x) == 0.5 * tanh(0.5 * x) + 0.5
    s = 0.5 * jnp.tanh(0.5 * x) + 0.5

    # Layout-preserving split along the (8, 128) vreg boundary, then a pure-VPU
    # partial reduce down to one vreg per quantity (no XLU, no full-tile
    # accumulator VMEM traffic).
    r = block_rows // SUBLANES
    part_i = jnp.sum((s * t).reshape(r, SUBLANES, LANES), axis=0)
    part_u = jnp.sum((s + t).reshape(r, SUBLANES, LANES), axis=0)

    acc_i_ref[...] += part_i.reshape(1, SUBLANES, LANES)
    acc_u_ref[...] += part_u.reshape(1, SUBLANES, LANES)


def iou_loss(inputs, targets, smooth=1.0, max_block_rows=MAX_BLOCK_ROWS,
             num_cores=NUM_CORES):
    """Pallas equivalent of IoULoss.forward(inputs, targets, smooth)."""
    x = inputs.reshape(-1)
    t = targets.reshape(-1)
    n = x.shape[0]

    # Lane-align and split rows across `num_cores` with block_rows a multiple
    # of 8 (so the in-kernel reshape sits exactly on vreg boundaries).
    rows = pl.cdiv(n, LANES)
    row_align = num_cores * SUBLANES
    rows_aligned = pl.cdiv(rows, row_align) * row_align
    rows_per_core = rows_aligned // num_cores
    block_rows = min(max_block_rows, rows_per_core)      # multiple of 8
    num_inner = pl.cdiv(rows_per_core, block_rows)
    rows_total = num_cores * num_inner * block_rows
    n_padded = rows_total * LANES

    if n_padded != n:
        pad = n_padded - n
        # sigmoid(-1e9) == 0 and padded t == 0, so padded elements contribute
        # exactly 0 to both sums -> no in-kernel masking needed.
        x = jnp.pad(x, (0, pad), constant_values=_NEG_PAD)
        t = jnp.pad(t, (0, pad), constant_values=0)

    x2 = x.reshape(rows_total, LANES)
    t2 = t.reshape(rows_total, LANES)

    kernel = functools.partial(_iou_kernel, block_rows=block_rows)

    in_bytes = x2.size * x2.dtype.itemsize + t2.size * t2.dtype.itemsize
    out_bytes = 2 * num_cores * SUBLANES * LANES * 4

    acc_i, acc_u = pl.pallas_call(
        kernel,
        out_shape=(
            jax.ShapeDtypeStruct((num_cores, SUBLANES, LANES), jnp.float32),
            jax.ShapeDtypeStruct((num_cores, SUBLANES, LANES), jnp.float32),
        ),
        grid_spec=pltpu.PrefetchScalarGridSpec(
            num_scalar_prefetch=0,
            grid=(num_cores, num_inner),
            in_specs=[
                pl.BlockSpec((block_rows, LANES),
                             lambda c, i: (c * num_inner + i, 0)),
                pl.BlockSpec((block_rows, LANES),
                             lambda c, i: (c * num_inner + i, 0)),
            ],
            out_specs=[
                pl.BlockSpec((1, SUBLANES, LANES), lambda c, i: (c, 0, 0)),
                pl.BlockSpec((1, SUBLANES, LANES), lambda c, i: (c, 0, 0)),
            ],
        ),
        compiler_params=pltpu.CompilerParams(
            dimension_semantics=("parallel", "arbitrary"),
            vmem_limit_bytes=48 * 1024 * 1024,
        ),
        cost_estimate=pl.CostEstimate(
            flops=8 * n_padded,
            transcendentals=n_padded,
            bytes_accessed=in_bytes + out_bytes,
        ),
    )(x2, t2)

    # Tiny final reductions (2 * num_cores vregs) + scalar loss math in JAX.
    intersection = jnp.sum(acc_i)
    total = jnp.sum(acc_u)
    union = total - intersection
    return 1.0 - (intersection + smooth) / (union + smooth)


def iou_loss_ref(inputs, targets, smooth=1.0):
    """Pure-JAX reference matching the PyTorch module."""
    s = jax.nn.sigmoid(inputs.astype(jnp.float32)).reshape(-1)
    t = targets.astype(jnp.float32).reshape(-1)
    inter = jnp.sum(s * t)
    total = jnp.sum(s + t)
    union = total - inter
    return 1.0 - (inter + smooth) / (union + smooth)


if __name__ == "__main__":
    key = jax.random.PRNGKey(0)
    k1, k2 = jax.random.split(key)

    # Small shapes consistent with a segmentation logit map: NCHW = (2, 4, 16, 16)
    inputs = jax.random.normal(k1, (2, 4, 16, 16), dtype=jnp.float32)
    targets = (jax.random.uniform(k2, (2, 4, 16, 16)) > 0.5).astype(jnp.float32)

    loss = iou_loss(inputs, targets, smooth=1.0)
    loss = jax.block_until_ready(loss)

    ref = iou_loss_ref(inputs, targets, smooth=1.0)
    assert jnp.allclose(loss, ref, rtol=1e-5, atol=1e-5), (loss, ref)

    print("KERNEL_OK")
</pallas_src>

<mosaic_0001>
module attributes {stable_mosaic.version = 11 : i64} {
  func.func @_iou_kernel(%arg0: i32, %arg1: i32, %arg2: memref<8x128xf32, #tpu.memory_space<vmem>>, %arg3: memref<8x128xf32, #tpu.memory_space<vmem>>, %arg4: memref<1x8x128xf32, #tpu.memory_space<vmem>>, %arg5: memref<1x8x128xf32, #tpu.memory_space<vmem>>) attributes {dimension_semantics = [#tpu.dimension_semantics<parallel>, #tpu.dimension_semantics<arbitrary>], iteration_bounds = array<i64: 2, 1>, scalar_prefetch = 0 : i64, scratch_operands = 0 : i64, tpu.core_type = #tpu.core_type<tc>, window_params = [{transform_indices = @transform_0, window_bounds = array<i64: 8, 128>}, {transform_indices = @transform_1, window_bounds = array<i64: 8, 128>}, {transform_indices = @transform_2, window_bounds = array<i64: 1, 8, 128>}, {transform_indices = @transform_3, window_bounds = array<i64: 1, 8, 128>}]} {
    %c0_i32 = arith.constant 0 : i32
    %0 = arith.cmpi eq, %arg1, %c0_i32 : i32
    %1 = arith.extui %0 : i1 to i32
    %c0_i32_0 = arith.constant 0 : i32
    %2 = arith.cmpi ne, %1, %c0_i32_0 : i32
    scf.if %2 {
      %cst_20 = arith.constant 0.000000e+00 : f32
      %26 = vector.broadcast %cst_20 : f32 to vector<1x8x128xf32>
      %c0_21 = arith.constant 0 : index
      %c0_22 = arith.constant 0 : index
      %c0_23 = arith.constant 0 : index
      %27 = vector.load %arg4[%c0_21, %c0_22, %c0_23] : memref<1x8x128xf32, #tpu.memory_space<vmem>>, vector<1x8x128xf32>
      tpu.vector_store %arg4[%c0_21, %c0_22, %c0_23], %26 {strides = array<i32>} : memref<1x8x128xf32, #tpu.memory_space<vmem>>, vector<1x8x128xf32>,
      %cst_24 = arith.constant 0.000000e+00 : f32
      %28 = vector.broadcast %cst_24 : f32 to vector<1x8x128xf32>
      %c0_25 = arith.constant 0 : index
      %c0_26 = arith.constant 0 : index
      %c0_27 = arith.constant 0 : index
      %29 = vector.load %arg5[%c0_25, %c0_26, %c0_27] : memref<1x8x128xf32, #tpu.memory_space<vmem>>, vector<1x8x128xf32>
      tpu.vector_store %arg5[%c0_25, %c0_26, %c0_27], %28 {strides = array<i32>} : memref<1x8x128xf32, #tpu.memory_space<vmem>>, vector<1x8x128xf32>,
    } else {
    }
    %c0 = arith.constant 0 : index
    %c0_1 = arith.constant 0 : index
    %3 = vector.load %arg2[%c0, %c0_1] : memref<8x128xf32, #tpu.memory_space<vmem>>, vector<8x128xf32>
    %c0_2 = arith.constant 0 : index
    %c0_3 = arith.constant 0 : index
    %4 = vector.load %arg3[%c0_2, %c0_3] : memref<8x128xf32, #tpu.memory_space<vmem>>, vector<8x128xf32>
    %cst = arith.constant 5.000000e-01 : f32
    %5 = vector.broadcast %cst : f32 to vector<8x128xf32>
    %6 = arith.mulf %5, %3 : vector<8x128xf32>
    %7 = math.tanh %6 : vector<8x128xf32>
    %cst_4 = arith.constant 5.000000e-01 : f32
    %8 = vector.broadcast %cst_4 : f32 to vector<8x128xf32>
    %9 = arith.mulf %8, %7 : vector<8x128xf32>
    %cst_5 = arith.constant 5.000000e-01 : f32
    %10 = vector.broadcast %cst_5 : f32 to vector<8x128xf32>
    %11 = arith.addf %9, %10 : vector<8x128xf32>
    %12 = arith.mulf %11, %4 : vector<8x128xf32>
    %13 = vector.shape_cast %12 : vector<8x128xf32> to vector<1x8x128xf32>
    %cst_6 = arith.constant dense<0.000000e+00> : vector<8x128xf32>
    %14 = vector.multi_reduction <add>, %13, %cst_6 [0] : vector<1x8x128xf32> to vector<8x128xf32>
    %15 = arith.addf %11, %4 : vector<8x128xf32>
    %16 = vector.shape_cast %15 : vector<8x128xf32> to vector<1x8x128xf32>
    %cst_7 = arith.constant dense<0.000000e+00> : vector<8x128xf32>
    %17 = vector.multi_reduction <add>, %16, %cst_7 [0] : vector<1x8x128xf32> to vector<8x128xf32>
    %c0_8 = arith.constant 0 : index
    %c0_9 = arith.constant 0 : index
    %c0_10 = arith.constant 0 : index
    %18 = vector.load %arg4[%c0_8, %c0_9, %c0_10] : memref<1x8x128xf32, #tpu.memory_space<vmem>>, vector<1x8x128xf32>
    %19 = vector.shape_cast %14 : vector<8x128xf32> to vector<1x8x128xf32>
    %20 = arith.addf %18, %19 : vector<1x8x128xf32>
    %c0_11 = arith.constant 0 : index
    %c0_12 = arith.constant 0 : index
    %c0_13 = arith.constant 0 : index
    %21 = vector.load %arg4[%c0_11, %c0_12, %c0_13] : memref<1x8x128xf32, #tpu.memory_space<vmem>>, vector<1x8x128xf32>
    tpu.vector_store %arg4[%c0_11, %c0_12, %c0_13], %20 {strides = array<i32>} : memref<1x8x128xf32, #tpu.memory_space<vmem>>, vector<1x8x128xf32>,
    %c0_14 = arith.constant 0 : index
    %c0_15 = arith.constant 0 : index
    %c0_16 = arith.constant 0 : index
    %22 = vector.load %arg5[%c0_14, %c0_15, %c0_16] : memref<1x8x128xf32, #tpu.memory_space<vmem>>, vector<1x8x128xf32>
    %23 = vector.shape_cast %17 : vector<8x128xf32> to vector<1x8x128xf32>
    %24 = arith.addf %22, %23 : vector<1x8x128xf32>
    %c0_17 = arith.constant 0 : index
    %c0_18 = arith.constant 0 : index
    %c0_19 = arith.constant 0 : index
    %25 = vector.load %arg5[%c0_17, %c0_18, %c0_19] : memref<1x8x128xf32, #tpu.memory_space<vmem>>, vector<1x8x128xf32>
    tpu.vector_store %arg5[%c0_17, %c0_18, %c0_19], %24 {strides = array<i32>} : memref<1x8x128xf32, #tpu.memory_space<vmem>>, vector<1x8x128xf32>,
    return
  }
  func.func @transform_0(%arg0: i32, %arg1: i32) -> (i32, i32) {
    %c1_i32 = arith.constant 1 : i32
    %0 = arith.muli %arg0, %c1_i32 : i32
    %1 = arith.addi %0, %arg1 : i32
    %c0_i32 = arith.constant 0 : i32
    %c0_i32_0 = arith.constant 0 : i32
    return %1, %c0_i32 : i32, i32
  }
  func.func @transform_1(%arg0: i32, %arg1: i32) -> (i32, i32) {
    %c1_i32 = arith.constant 1 : i32
    %0 = arith.muli %arg0, %c1_i32 : i32
    %1 = arith.addi %0, %arg1 : i32
    %c0_i32 = arith.constant 0 : i32
    %c0_i32_0 = arith.constant 0 : i32
    return %1, %c0_i32 : i32, i32
  }
  func.func @transform_2(%arg0: i32, %arg1: i32) -> (i32, i32, i32) {
    %c0_i32 = arith.constant 0 : i32
    %c0_i32_0 = arith.constant 0 : i32
    %c0_i32_1 = arith.constant 0 : i32
    return %arg0, %c0_i32, %c0_i32_0 : i32, i32, i32
  }
  func.func @transform_3(%arg0: i32, %arg1: i32) -> (i32, i32, i32) {
    %c0_i32 = arith.constant 0 : i32
    %c0_i32_0 = arith.constant 0 : i32
    %c0_i32_1 = arith.constant 0 : i32
    return %arg0, %c0_i32, %c0_i32_0 : i32, i32, i32
  }
}

</mosaic_0001>

<bundles_post_ra>
// kernel: tpu_custom_call.1
= control target key start
LH: loop header
LB: loop body
LE: loop exit
PB: predicated region body
PF: predicated region fallthrough
CT: control target
= control target key end

     0   :  { %9 = vsyncpa [#allocation3], 0  ;;  %s934_s0 = inlined_call_operand.hbm [shape: f32[16,128], index: 0, kind: input, shape index: {}]   ;;  %s935_s1 = inlined_call_operand.hbm [shape: f32[16,128], index: 1, kind: input, shape index: {}]   ;;  %s936_s2 = inlined_call_operand.hbm [shape: f32[2,8,128], index: 2, kind: output, shape index: {0}]   ;;  %s937_s3 = inlined_call_operand.hbm [shape: f32[2,8,128], index: 3, kind: output, shape index: {1}]  }
   0x1   :  { %11 = vsyncpa [#allocation3 + $0x1], 0 }
   0x2   :  { %12 = vsyncpa [#allocation6], 0 }
   0x3   :  { %14 = vsyncpa [#allocation6 + $0x1], 0 }
   0x4   :  { %15 = vsyncpa [#allocation4], 0 }
   0x5   :  { %17 = vsyncpa [#allocation4 + $0x1], 0 }
   0x6   :  { %18 = vsyncpa [#allocation9], 0 }
   0x7   :  { %20 = vsyncpa [#allocation9 + $0x1], 0  ;;  %s733_s12 = smov 0   ;;  %s735_s13 = smov 0  }
   0x8   :  { %s737_s14 = smov 0   ;;  %s739_s15 = smov 0  }
   0x9   :  { %s741_s16 = smov 0   ;;  %s743_s17 = smov 0  }
   0xa LB: > { %s443_s18 = sadd.s32 4294967295, %s707_s17   ;;  %s444_s19 = sadd.s32 4294967294, %s707_s17   ;;  %s707_s17 = sphi %s743_s17, %s26_s17   ;;  %s703_s16 = sphi %s741_s16, %s949_s16   ;;  %s699_s15 = sphi %s739_s15, %s948_s15   ;;  %s695_s14 = sphi %s737_s14, %s947_s14   ;;  %s691_s13 = sphi %s735_s13, %s946_s13   ;;  %s687_s12 = sphi %s733_s12, %s945_s12  }
   0xb   : > { %s38_s20 = sadd.s32 1, %s703_s16  ;;  %s47_s21 = sadd.s32 1, %s695_s14 }
   0xc   : > { %p40_p0 = scmp.ge.s32.totalorder %s38_s20, 2  ;;  %p54_p1 = scmp.ne.s32.totalorder %s695_s14, %s691_s13 }
   0xd   : > { %p55_p2 = scmp.eq.s32.totalorder %s707_s17, 0  ;;  %p60_p3 = scmp.ne.s32.totalorder %s691_s13, %s687_s12 }
   0xe   : > { %s951_s20 = smov (%p40_p0, %s38_s20), 0  ;;  %p61_p5 = scmp.eq.s32.totalorder %s443_s18, 0 }
   0xf   : > { %p774_p4 = por %p55_p2, %p54_p1  ;;  %s44_s23 = ssub.s32 %s703_s16, %s951_s20 }
  0x10   : > { %p112_p6 = scmp.eq.s32.totalorder %s443_s18, 1  ;;  %p45_p7 = scmp.eq.s32.totalorder %s44_s23, 0 }
  0x11   : > { %p780_p8 = por %p61_p5, %p60_p3  ;;  %p118_p10 = scmp.eq.s32.totalorder %s444_s19, 1 }
  0x12   : > { %p784_p9 = por %p112_p6, %p54_p1  ;;  %p484_p13 = scmp.lt.s32.totalorder %s707_s17, 2 }
  0x13   : > { %s789_s26 = scalar_select %p45_p7, %s695_s14, %s47_s21  }
  0x14   : > { %p791_p11 = por %p118_p10, %p60_p3  ;;  %s798_s28 = sand.u32 1, %s695_s14  }
  0x15   : > { %s447_s29 = sshll.u32 %s798_s28, 3  ;;  %s448_s30 = sshll.u32 %s703_s16, 7 }
  0x16   : > { %s174_s6 = scalar_lea.hbm %s934_s0, %s448_s30  ;;  %s168_s7 = scalar_lea.vmem [#allocation2], %s447_s29 }
  0x17   : > { %s176_s8 = sshll.u32 %s168_s7, 4  ;;  %p807_p0 = pnand %p484_p13, %p774_p4  ;;  %s177_s8 = int_to_ptr.vmem [resolvable:$true] %s176_s8 }
  0x18   : > { %p451_p1 = scmp.ge.s32.totalorder %s707_s17, 1  ;;  %p200_p2 = scmp.lt.s32.totalorder %s707_s17, 3 }
  0x19   : > { %s165_s10 = scalar_lea.sflag [#allocation3], %s798_s28  ;;  %p539_p3 = pneg %p807_p0 }
  0x1a   : > { %s550_s11 = scalar_lea.vmem %s177_s8, 128  ;;  %s709_s18 = smov [#allocation2]  }
  0x1b   : > { %p551_p5 = scmp.ne.s32.totalorder %s177_s8, %s550_s11  ;;  %s555_s19 = sshll.u32 %s709_s18, 4  ;;  %s556_s19 = int_to_ptr.vmem [resolvable:$false] %s555_s19 }
  0x1c   : > { %s557_s21 = scalar_lea.vmem %s556_s19, 256  ;;  %p558_p4 = scmp.lt.s32.totalorder %s177_s8, %s556_s19 }
  0x1d   : > { %p553_p6 = pnand %p551_p5, %p539_p3  ;;  %p559_p10 = scmp.lt.s32.totalorder %s557_s21, %s550_s11 }
  0x1f   : > { %p554_p7 = pneg %p553_p6  ;;  %p560_p13 = por %p559_p10, %p558_p4 }
  0x21   : > { %p561_p12 = pnand %p560_p13, %p554_p7 }
  0x23   : > { %564 = shalt.err (!%p561_p12)
}
  0x24   : > { %473 = dma.hbm_to_vmem [thread:$0]  (!%p807_p0), %s174_s6, 128, %s177_s8, %s165_s10  }
  0x25   : > { %p825_p5 = pnand %p451_p1, %p200_p2  ;;  %s193_s5 = scalar_lea.hbm %s935_s1, %s448_s30 }
  0x26   : > { %s187_s7 = scalar_lea.vmem [#allocation5], %s447_s29  ;;  %s184_s18 = scalar_lea.sflag [#allocation6], %s798_s28 }
  0x27   : > { %s195_s11 = sshll.u32 %s187_s7, 4  ;;  %s710_s6 = smov [#allocation5]   ;;  %s196_s11 = int_to_ptr.vmem [resolvable:$true] %s195_s11 }
  0x28   : > { %s578_s19 = scalar_lea.vmem %s196_s11, 128  ;;  %s583_s8 = sshll.u32 %s710_s6, 4  ;;  %s584_s8 = int_to_ptr.vmem [resolvable:$false] %s583_s8 }
  0x29   : > { %p579_p12 = scmp.ne.s32.totalorder %s196_s11, %s578_s19  ;;  %s585_s10 = scalar_lea.vmem %s584_s8, 256 }
  0x2a   : > { %p586_p1 = scmp.lt.s32.totalorder %s196_s11, %s584_s8  ;;  %p587_p2 = scmp.lt.s32.totalorder %s585_s10, %s578_s19 }
  0x2b   : > { %p581_p6 = pnand %p579_p12, %p539_p3 }
  0x2c   : > { %p588_p4 = por %p587_p2, %p586_p1 }
  0x2d   : > { %p582_p7 = pneg %p581_p6 }
  0x2f   : > { %p589_p10 = pnand %p588_p4, %p582_p7 }
  0x31   : > { %592 = shalt.err (!%p589_p10)
}
  0x32   : > { %476 = dma.hbm_to_vmem [thread:$0]  (!%p807_p0), %s193_s5, 128, %s196_s11, %s184_s18  }
  0x33   : > { %204 = sbr.rel (%p825_p5) target bundleno = 117 (0x75), region = 28  ;;  %s841_s28 = sand.u32 (!%p825_p5), 1, %s691_s13  }
  0x34   : > { %s452_s29 = sshll.u32 (!%p825_p5), %s841_s28, 3  ;;  %s207_s30 = scalar_lea.sflag (!%p825_p5), [#allocation3], %s841_s28 }
  0x35   : > { %s210_s21 = scalar_lea.vmem (!%p825_p5), [#allocation2], %s452_s29 }
  0x38   : > { %670 = dma.done.wait (%p780_p8), %s207_s30, 128  }
  0x39   : > { %672 = vsyncadd (%p780_p8), %s207_s30, 4294967168  ;;  %s216_s9 = scalar_lea.sflag [#allocation6], %s841_s28  ;;  %s219_s23 = scalar_lea.vmem [#allocation5], %s452_s29 }
  0x3a   : > { %674 = dma.done.wait (%p780_p8), %s216_s9, 128  }
  0x3b   : > { %676 = vsyncadd (%p780_p8), %s216_s9, 4294967168  ;;  %v260_v0 = vld [vmem:[%s210_s21] sm:$0xff]  ;;  %v261_v4 = vld [vmem:[%s219_s23] sm:$0xff]  ;;  %s458_s22 = sshll.u32 %s699_s15, 7  ;;  %s244_s4 = scalar_lea.vmem [#allocation7], %s452_s29 }
  0x3c   : > { %v262_v1 = vmul.f32 0.5, %v260_v0  ;;  %s295_s5 = sshll.u32 %s244_s4, 4  ;;  %s251_s7 = scalar_lea.vmem [#allocation8], %s452_s29  ;;  %s860_s5 = int_to_ptr.vmem [resolvable:$true] %s295_s5 }
  0x3d   : > { %s308_s11 = sshll.u32 %s251_s7, 4  ;;  %s858_s19 = scalar_lea.hbm %s936_s2, %s458_s22  ;;  %s867_s11 = int_to_ptr.vmem [resolvable:$true] %s308_s11 }
  0x3e   : > { %535 = vtanh.f32 %v262_v1  ;;  %s865_s15 = scalar_lea.hbm %s937_s3, %s458_s22  ;;  %s277_s10 = scalar_lea.sflag [#allocation4], %s841_s28 }
  0x3f   : > { %s593_s29 = scalar_lea.vmem %s860_s5, 128  ;;  %s711_s30 = smov [#allocation7]  }
  0x40   : > { %p594_p8 = scmp.ne.s32.totalorder %s860_s5, %s593_s29  ;;  %s597_s21 = sshll.u32 %s711_s30, 4  ;;  %s598_s21 = int_to_ptr.vmem [resolvable:$false] %s597_s21 }
  0x41   : > { %s599_s9 = scalar_lea.vmem %s598_s21, 256  ;;  %p600_p13 = scmp.lt.s32.totalorder %s860_s5, %s598_s21 }
  0x42   : > { %p595_p0 = pnand %p594_p8, %p784_p9  ;;  %p601_p5 = scmp.lt.s32.totalorder %s599_s9, %s593_s29 }
  0x44   : > { %p596_p3 = pneg %p595_p0  ;;  %p602_p12 = por %p601_p5, %p600_p13 }
  0x46   : > { %p603_p6 = pnand %p602_p12, %p596_p3 }
  0x4b   : > { %v536_v2 = vpop.eup %535 }
  0x4c   : > { %v264_v3 = vmul.f32 0.5, %v536_v2 }
  0x4e   : > { %v265_v5 = vadd.f32 0.5, %v264_v3 }
  0x50   : > { %v266_v6 = vmul.f32 %v265_v5, %v261_v4  ;;  %v268_v7 = vadd.f32 %v265_v5, %v261_v4 }
  0x52   : > { %272 = vst [vmem:[%s244_s4] sm:$0xff] %v266_v6  ;;  %275 = vst [vmem:[%s251_s7] sm:$0xff] %v268_v7 }
  0x53   : > { %606 = shalt.err (!%p603_p6)
}
  0x54   : > { %s607_s23 = scalar_lea.hbm %s858_s19, 128  ;;  %s611_s7 = scalar_lea.hbm %s936_s2, 256 }
  0x55   : > { %p608_p7 = scmp.ne.s32.totalorder %s858_s19, %s607_s23  ;;  %p612_p4 = scmp.lt.s32.totalorder %s858_s19, %s936_s2 }
  0x56   : > { %p613_p10 = scmp.lt.s32.totalorder %s611_s7, %s607_s23 }
  0x57   : > { %p609_p1 = pnand %p608_p7, %p784_p9 }
  0x58   : > { %p614_p8 = por %p613_p10, %p612_p4 }
  0x59   : > { %p610_p2 = pneg %p609_p1 }
  0x5b   : > { %p615_p0 = pnand %p614_p8, %p610_p2 }
  0x5d   : > { %618 = shalt.err (!%p615_p0)
}
  0x5e   : > { %466 = dma.vmem_to_hbm [thread:$0]  (%p784_p9), %s860_s5, 128, %s858_s19, %s277_s10  }
  0x5f   : > { %s282_s6 = scalar_lea.sflag [#allocation9], %s841_s28  ;;  %s619_s8 = scalar_lea.vmem %s867_s11, 128 }
  0x60   : > { %p620_p3 = scmp.ne.s32.totalorder %s867_s11, %s619_s8  ;;  %s712_s29 = smov [#allocation8]  }
  0x61   : > { %s623_s30 = sshll.u32 %s712_s29, 4  ;;  %s624_s30 = int_to_ptr.vmem [resolvable:$false] %s623_s30 }
  0x62   : > { %p621_p13 = pnand %p620_p3, %p784_p9  ;;  %s625_s21 = scalar_lea.vmem %s624_s30, 256 }
  0x63   : > { %p626_p12 = scmp.lt.s32.totalorder %s867_s11, %s624_s30  ;;  %p627_p6 = scmp.lt.s32.totalorder %s625_s21, %s619_s8 }
  0x64   : > { %p622_p5 = pneg %p621_p13 }
  0x65   : > { %p628_p7 = por %p627_p6, %p626_p12 }
  0x67   : > { %p629_p1 = pnand %p628_p7, %p622_p5 }
  0x69   : > { %632 = shalt.err (!%p629_p1)
}
  0x6a   : > { %s633_s5 = scalar_lea.hbm %s865_s15, 128  ;;  %s637_s10 = scalar_lea.hbm %s937_s3, 256 }
  0x6b   : > { %p634_p2 = scmp.ne.s32.totalorder %s865_s15, %s633_s5  ;;  %p638_p8 = scmp.lt.s32.totalorder %s865_s15, %s937_s3 }
  0x6c   : > { %p639_p0 = scmp.lt.s32.totalorder %s637_s10, %s633_s5 }
  0x6d   : > { %p635_p4 = pnand %p634_p2, %p784_p9 }
  0x6e   : > { %p640_p3 = por %p639_p0, %p638_p8 }
  0x6f   : > { %p636_p10 = pneg %p635_p4 }
  0x71   : > { %p641_p13 = pnand %p640_p3, %p636_p10 }
  0x73   : > { %644 = shalt.err (!%p641_p13)
}
  0x74   : > { %467 = dma.vmem_to_hbm [thread:$0]  (%p784_p9), %s867_s11, 128, %s865_s15, %s282_s6  }
  0x75 PF: > { %s320_s22 = sand.u32 1, %s687_s12   ;;  %p944_p5 = scmp.ge.s32.totalorder %s707_s17, 2 }
  0x76   : > { %s321_s4 = scalar_lea.sflag [#allocation4], %s320_s22 }
  0x77   : > { %p478_p12 = pnand %p944_p5, %p791_p11 }
  0x79   : > { %p479_p6 = pneg %p478_p12 }
  0x7b   : > { %678 = dma.done.wait (%p479_p6), %s321_s4, 128  }
  0x7c   : > { %680 = vsyncadd (%p479_p6), %s321_s4, 4294967168  ;;  %s330_s7 = scalar_lea.sflag [#allocation9], %s320_s22 }
  0x7d   : > { %682 = dma.done.wait (%p479_p6), %s330_s7, 128  }
  0x7e   : > { %684 = vsyncadd (%p479_p6), %s330_s7, 4294967168  ;;  %s26_s17 = sadd.s32 1, %s707_s17   ;;  %s945_s12 = smov %s691_s13 }
  0x7f   : > { %p23_p7 = scmp.ge.s32.totalorder %s26_s17, 4   ;;  %s946_s13 = smov %s695_s14 }
  0x80   : > { %s947_s14 = smov %s789_s26  ;;  %s948_s15 = smov %s703_s16 }
  0x81   : > { %s949_s16 = smov %s951_s20  ;;  %25 = sbr.rel (!%p23_p7) target bundleno = 10 (0xa), region = 107 }
  0x86   :  { %335 = vsyncpa [#allocation3], 1 }
  0x87   :  { %337 = vsyncpa [#allocation3 + $0x1], 1 }
  0x88   :  { %338 = vsyncpa [#allocation6], 1 }
  0x89   :  { %340 = vsyncpa [#allocation6 + $0x1], 1 }
  0x8a   :  { %341 = vsyncpa [#allocation4], 1 }
  0x8b   :  { %343 = vsyncpa [#allocation4 + $0x1], 1 }
  0x8c   :  { %344 = vsyncpa [#allocation9], 1 }
  0x8d   :  { %346 = vsyncpa [#allocation9 + $0x1], 1 }

</bundles_post_ra>
